<compile_context>
chip_gen: v6e
topology: v6e:2x2x1
jax: 0.10.0
libtpu: 0.0.40
codegen_flags: <defaults>
</compile_context>

<pallas_src>
import math
import jax
import jax.numpy as jnp
from jax.experimental import pallas as pl
from jax.experimental.pallas import tpu as pltpu


# ---------------------------------------------------------------------------
# Kernel
# ---------------------------------------------------------------------------
def _final_layer_kernel(x_ref, w_ref, b_ref, out_ref):
    # x_ref: [TM, W] bf16, w_ref: [W, Lp] bf16, b_ref: [1, Lp] f32,
    # out_ref: [TM, Lp] f32.  Single MXU dot with an f32 accumulator.
    out_ref[...] = (
        jnp.dot(x_ref[...], w_ref[...], preferred_element_type=jnp.float32)
        + b_ref[...]
    )


# ---------------------------------------------------------------------------
# Parameter construction (mirrors FinalLayer.__init__, weight_norm=False path)
# ---------------------------------------------------------------------------
def make_autoregressive_mask(latent_dim: int, layer_width: int) -> jnp.ndarray:
    """Same mask construction as FinalLayerMask.__init__."""
    assert latent_dim >= 2, "latent_dim must be >= 2 (reference divides by latent_dim - 1)"
    nodes_per_latent_dim = layer_width / (latent_dim - 1)
    rows = []
    for layer_node in range(layer_width):
        highest = int(layer_node // nodes_per_latent_dim)
        row = jnp.where(jnp.arange(latent_dim) <= highest, 0.0, 1.0)
        rows.append(row)
    return jnp.stack(rows, axis=0).astype(jnp.float32)


def init_final_layer_params(key, latent_dim: int, layer_width: int,
                            init_zeros: bool = True):
    km, ks = jax.random.split(key)
    if init_zeros:
        w_m = jnp.zeros((layer_width, latent_dim), jnp.float32)
        w_s = jnp.zeros((layer_width, latent_dim), jnp.float32)
    else:
        # kaiming_normal_: std = gain / sqrt(fan_in), gain = sqrt(2),
        # fan_in = size(1) = latent_dim for a 2-D tensor.
        std = math.sqrt(2.0 / latent_dim)
        w_m = std * jax.random.normal(km, (layer_width, latent_dim), jnp.float32)
        w_s = std * jax.random.normal(ks, (layer_width, latent_dim), jnp.float32)
    b_m = jnp.zeros((latent_dim,), jnp.float32)
    b_s = jnp.zeros((latent_dim,), jnp.float32)
    mask = make_autoregressive_mask(latent_dim, layer_width)
    return dict(w_m=w_m, b_m=b_m, w_s=w_s, b_s=b_s, mask=mask)


def _round_up(n: int, m: int) -> int:
    return ((n + m - 1) // m) * m


def pack_final_layer_params(params):
    """One-time setup: apply the (constant) autoregressive mask, concatenate
    m/s weights and biases, zero-pad the output lane axis to a multiple of 128
    (lane-dense stores), and cast the weights to bf16 (bias stays f32)."""
    mask = params["mask"]
    wm = params["w_m"] * mask
    ws = params["w_s"] * mask
    W, L = wm.shape
    Lp = _round_up(2 * L, 128)

    w_cat = jnp.concatenate([wm, ws], axis=1)                        # [W, 2L]
    w_pad = jnp.zeros((W, Lp), jnp.float32).at[:, : 2 * L].set(w_cat)

    b_cat = jnp.concatenate([params["b_m"], params["b_s"]], axis=0)  # [2L]
    b_pad = jnp.zeros((1, Lp), jnp.float32).at[0, : 2 * L].set(b_cat)

    return dict(w=w_pad.astype(jnp.bfloat16), b=b_pad,
                latent_dim=L, layer_width=W, lanes=Lp)


# ---------------------------------------------------------------------------
# Tile / VMEM sizing
# ---------------------------------------------------------------------------
def _vmem_budget_bytes() -> int:
    # Request well below physical capacity so the compiler keeps headroom:
    # v5e/v6e (128 MiB physical) -> 64 MiB, v7x (64 MiB per TC) -> 48 MiB.
    try:
        phys = int(pltpu.get_tpu_info().vmem_capacity_bytes)
    except Exception:
        phys = 64 << 20  # conservative fallback (v7x-sized)
    return min(64 << 20, (phys * 3) // 4)


def _choose_tm(B: int, W: int, Lp: int, vmem_budget: int) -> int:
    # bf16 x (double-buffered) + f32 out (double-buffered) + resident bf16
    # weights + f32 bias must fit the requested VMEM limit with headroom.
    def fits(tm):
        need = 2 * tm * W * 2 + 2 * tm * Lp * 4 + W * Lp * 2 + Lp * 4
        return need <= (vmem_budget * 3) // 4

    tm = 1024
    while tm > 8 and not fits(tm):
        tm //= 2
    # TODO(synk): for very large layer_width (>= ~8K, where even tm=8 would
    # not fit) add a K grid axis with a VMEM f32 accumulator instead of
    # shrinking TM further.
    if B <= tm:
        # Split small batches so the "parallel" grid axis has >= 2 steps and
        # both v7x TensorCores get fed; never below the 8-row sublane tile.
        tm = max(8, _round_up(-(-B // 2), 8))
    return tm


# ---------------------------------------------------------------------------
# Forward
# ---------------------------------------------------------------------------
def _pallas_forward(x_c, w, b, TM, single_buffer_weights, vmem_limit):
    B, W = x_c.shape
    Lp = w.shape[1]
    resident = {"pipeline_mode": pl.Buffered(1)} if single_buffer_weights else {}

    grid_spec = pl.GridSpec(
        grid=(pl.cdiv(B, TM),),
        in_specs=[
            pl.BlockSpec((TM, W), lambda i: (i, 0)),              # x (pipelined)
            pl.BlockSpec((W, Lp), lambda i: (0, 0), **resident),  # weights (resident)
            pl.BlockSpec((1, Lp), lambda i: (0, 0), **resident),  # bias (resident)
        ],
        out_specs=pl.BlockSpec((TM, Lp), lambda i: (i, 0)),
    )

    return pl.pallas_call(
        _final_layer_kernel,
        grid_spec=grid_spec,
        out_shape=jax.ShapeDtypeStruct((B, Lp), jnp.float32),
        compiler_params=pltpu.CompilerParams(
            dimension_semantics=("parallel",),
            vmem_limit_bytes=int(vmem_limit),
        ),
    )(x_c, w, b)


def final_layer_forward(x, packed, use_pallas=None):
    """x: [B, layer_width] -> (m, s), each [B, latent_dim] (f32)."""
    B, W = x.shape
    L = packed["latent_dim"]
    Lp = packed["lanes"]
    assert W == packed["layer_width"]

    if use_pallas is None:
        # A single-step pallas_call has fixed launch/pipeline overhead that
        # dwarfs a tiny matmul; let XLA's fused GEMM handle very small batches.
        use_pallas = B >= 128

    if not use_pallas:
        out = jnp.dot(x.astype(jnp.bfloat16), packed["w"],
                      preferred_element_type=jnp.float32) + packed["b"]
        return out[:, :L], out[:, L:2 * L]

    x_c = x.astype(jnp.bfloat16)
    vmem_limit = _vmem_budget_bytes()
    TM = _choose_tm(B, W, Lp, vmem_limit)

    try:
        out = _pallas_forward(x_c, packed["w"], packed["b"], TM,
                              single_buffer_weights=True,
                              vmem_limit=vmem_limit)
    except Exception:
        # pipeline_mode=pl.Buffered(1) unsupported on this build: fall back to
        # the default (double-buffered) resident weights — still correct,
        # just slightly more VMEM.
        out = _pallas_forward(x_c, packed["w"], packed["b"], TM,
                              single_buffer_weights=False,
                              vmem_limit=vmem_limit)

    return out[:, :L], out[:, L:2 * L]


def final_layer_reference(x, params, cast_dtype=None):
    """Pure-JAX reference. cast_dtype=jnp.bfloat16 mimics the kernel's input
    rounding for tight-tolerance comparison."""
    wm = params["w_m"] * params["mask"]
    ws = params["w_s"] * params["mask"]
    if cast_dtype is not None:
        x = x.astype(cast_dtype).astype(jnp.float32)
        wm = wm.astype(cast_dtype).astype(jnp.float32)
        ws = ws.astype(cast_dtype).astype(jnp.float32)
    m = x @ wm + params["b_m"][None, :]
    s = x @ ws + params["b_s"][None, :]
    return m, s


# ---------------------------------------------------------------------------
if __name__ == "__main__":
    key = jax.random.PRNGKey(0)
    k_x, k_p, k_x2, k_p2 = jax.random.split(key, 4)

    # --- test 1: small shapes (module default sizes kept tiny) -------------
    batch, layer_width, latent_dim = 8, 32, 8
    x = jax.random.normal(k_x, (batch, layer_width), jnp.float32)
    # Module default is init_zeros=True (all-zero weights); use False so the
    # kernel output is non-trivial while staying deterministic.
    params = init_final_layer_params(k_p, latent_dim, layer_width,
                                     init_zeros=False)
    packed = pack_final_layer_params(params)

    m, s = final_layer_forward(x, packed, use_pallas=True)
    jax.block_until_ready((m, s))
    assert m.shape == (batch, latent_dim) and s.shape == (batch, latent_dim)

    m_bf, s_bf = final_layer_reference(x, params, cast_dtype=jnp.bfloat16)
    m_f32, s_f32 = final_layer_reference(x, params)
    assert jnp.allclose(m, m_bf, atol=1e-3, rtol=1e-3)
    assert jnp.allclose(s, s_bf, atol=1e-3, rtol=1e-3)
    assert jnp.allclose(m, m_f32, atol=1e-1, rtol=1e-1)
    assert jnp.allclose(s, s_f32, atol=1e-1, rtol=1e-1)

    # --- test 2: non-divisible batch exercises the masked partial block ----
    batch2, layer_width2, latent_dim2 = 200, 96, 6
    x2 = jax.random.normal(k_x2, (batch2, layer_width2), jnp.float32)
    params2 = init_final_layer_params(k_p2, latent_dim2, layer_width2,
                                      init_zeros=False)
    packed2 = pack_final_layer_params(params2)

    m2, s2 = final_layer_forward(x2, packed2, use_pallas=True)
    jax.block_until_ready((m2, s2))
    m2_bf, s2_bf = final_layer_reference(x2, params2, cast_dtype=jnp.bfloat16)
    assert jnp.allclose(m2, m2_bf, atol=1e-3, rtol=1e-3)
    assert jnp.allclose(s2, s2_bf, atol=1e-3, rtol=1e-3)

    print("KERNEL_OK")
</pallas_src>

<mosaic_0001>
module attributes {stable_mosaic.version = 11 : i64} {
  func.func @_final_layer_kernel(%arg0: i32, %arg1: memref<8x32xbf16, #tpu.memory_space<vmem>>, %arg2: memref<32x128xbf16, #tpu.memory_space<vmem>>, %arg3: memref<1x128xf32, #tpu.memory_space<vmem>>, %arg4: memref<8x128xf32, #tpu.memory_space<vmem>>) attributes {dimension_semantics = [#tpu.dimension_semantics<parallel>], iteration_bounds = array<i64: 1>, scalar_prefetch = 0 : i64, scratch_operands = 0 : i64, tpu.core_type = #tpu.core_type<tc>, window_params = [{transform_indices = @transform_0, window_bounds = array<i64: 8, 32>}, {pipeline_mode = #tpu.pipeline_mode<synchronous>, transform_indices = @transform_1, window_bounds = array<i64: 32, 128>}, {pipeline_mode = #tpu.pipeline_mode<synchronous>, transform_indices = @transform_2, window_bounds = array<i64: 1, 128>}, {transform_indices = @transform_3, window_bounds = array<i64: 8, 128>}]} {
    %c0 = arith.constant 0 : index
    %c0_0 = arith.constant 0 : index
    %0 = vector.load %arg1[%c0, %c0_0] : memref<8x32xbf16, #tpu.memory_space<vmem>>, vector<8x32xbf16>
    %c0_1 = arith.constant 0 : index
    %c0_2 = arith.constant 0 : index
    %1 = vector.load %arg2[%c0_1, %c0_2] : memref<32x128xbf16, #tpu.memory_space<vmem>>, vector<32x128xbf16>
    %cst = arith.constant dense<0.000000e+00> : vector<8x128xf32>
    %2 = tpu.matmul %0, %1, %cst {dimension_numbers = #tpu.dot_dimension_numbers<[1], [0], [0], [1], [0, 0, 1, 1], [], []>} : vector<8x32xbf16>, vector<32x128xbf16>, vector<8x128xf32> -> vector<8x128xf32>
    %c0_3 = arith.constant 0 : index
    %c0_4 = arith.constant 0 : index
    %3 = vector.load %arg3[%c0_3, %c0_4] : memref<1x128xf32, #tpu.memory_space<vmem>>, vector<1x128xf32>
    %4 = vector.broadcast %3 : vector<1x128xf32> to vector<8x128xf32>
    %5 = arith.addf %2, %4 : vector<8x128xf32>
    %c0_5 = arith.constant 0 : index
    %c0_6 = arith.constant 0 : index
    %6 = vector.load %arg4[%c0_5, %c0_6] : memref<8x128xf32, #tpu.memory_space<vmem>>, vector<8x128xf32>
    tpu.vector_store %arg4[%c0_5, %c0_6], %5 {strides = array<i32>} : memref<8x128xf32, #tpu.memory_space<vmem>>, vector<8x128xf32>,
    return
  }
  func.func @transform_0(%arg0: i32) -> (i32, i32) {
    %c0_i32 = arith.constant 0 : i32
    %c0_i32_0 = arith.constant 0 : i32
    return %arg0, %c0_i32 : i32, i32
  }
  func.func @transform_1(%arg0: i32) -> (i32, i32) {
    %c0_i32 = arith.constant 0 : i32
    %c0_i32_0 = arith.constant 0 : i32
    %c0_i32_1 = arith.constant 0 : i32
    return %c0_i32, %c0_i32_0 : i32, i32
  }
  func.func @transform_2(%arg0: i32) -> (i32, i32) {
    %c0_i32 = arith.constant 0 : i32
    %c0_i32_0 = arith.constant 0 : i32
    %c0_i32_1 = arith.constant 0 : i32
    return %c0_i32, %c0_i32_0 : i32, i32
  }
  func.func @transform_3(%arg0: i32) -> (i32, i32) {
    %c0_i32 = arith.constant 0 : i32
    %c0_i32_0 = arith.constant 0 : i32
    return %arg0, %c0_i32 : i32, i32
  }
}

module attributes {stable_mosaic.version = 11 : i64} {
  func.func @_final_layer_kernel(%arg0: i32, %arg1: memref<8x32xbf16, #tpu.memory_space<vmem>>, %arg2: memref<32x128xbf16, #tpu.memory_space<vmem>>, %arg3: memref<1x128xf32, #tpu.memory_space<vmem>>, %arg4: memref<8x128xf32, #tpu.memory_space<vmem>>) attributes {dimension_semantics = [#tpu.dimension_semantics<parallel>], iteration_bounds = array<i64: 1>, scalar_prefetch = 0 : i64, scratch_operands = 0 : i64, tpu.core_type = #tpu.core_type<tc>, window_params = [{transform_indices = @transform_0, window_bounds = array<i64: 8, 32>}, {pipeline_mode = #tpu.pipeline_mode<synchronous>, transform_indices = @transform_1, window_bounds = array<i64: 32, 128>}, {pipeline_mode = #tpu.pipeline_mode<synchronous>, transform_indices = @transform_2, window_bounds = array<i64: 1, 128>}, {transform_indices = @transform_3, window_bounds = array<i64: 8, 128>}]} {
    %c0 = arith.constant 0 : index
    %c0_0 = arith.constant 0 : index
    %0 = vector.load %arg1[%c0, %c0_0] : memref<8x32xbf16, #tpu.memory_space<vmem>>, vector<8x32xbf16>
    %c0_1 = arith.constant 0 : index
    %c0_2 = arith.constant 0 : index
    %1 = vector.load %arg2[%c0_1, %c0_2] : memref<32x128xbf16, #tpu.memory_space<vmem>>, vector<32x128xbf16>
    %cst = arith.constant dense<0.000000e+00> : vector<8x128xf32>
    %2 = tpu.matmul %0, %1, %cst {dimension_numbers = #tpu.dot_dimension_numbers<[1], [0], [0], [1], [0, 0, 1, 1], [], []>} : vector<8x32xbf16>, vector<32x128xbf16>, vector<8x128xf32> -> vector<8x128xf32>
    %c0_3 = arith.constant 0 : index
    %c0_4 = arith.constant 0 : index
    %3 = vector.load %arg3[%c0_3, %c0_4] : memref<1x128xf32, #tpu.memory_space<vmem>>, vector<1x128xf32>
    %4 = vector.broadcast %3 : vector<1x128xf32> to vector<8x128xf32>
    %5 = arith.addf %2, %4 : vector<8x128xf32>
    %c0_5 = arith.constant 0 : index
    %c0_6 = arith.constant 0 : index
    %6 = vector.load %arg4[%c0_5, %c0_6] : memref<8x128xf32, #tpu.memory_space<vmem>>, vector<8x128xf32>
    tpu.vector_store %arg4[%c0_5, %c0_6], %5 {strides = array<i32>} : memref<8x128xf32, #tpu.memory_space<vmem>>, vector<8x128xf32>,
    return
  }
  func.func @transform_0(%arg0: i32) -> (i32, i32) {
    %c0_i32 = arith.constant 0 : i32
    %c0_i32_0 = arith.constant 0 : i32
    return %arg0, %c0_i32 : i32, i32
  }
  func.func @transform_1(%arg0: i32) -> (i32, i32) {
    %c0_i32 = arith.constant 0 : i32
    %c0_i32_0 = arith.constant 0 : i32
    %c0_i32_1 = arith.constant 0 : i32
    return %c0_i32, %c0_i32_0 : i32, i32
  }
  func.func @transform_2(%arg0: i32) -> (i32, i32) {
    %c0_i32 = arith.constant 0 : i32
    %c0_i32_0 = arith.constant 0 : i32
    %c0_i32_1 = arith.constant 0 : i32
    return %c0_i32, %c0_i32_0 : i32, i32
  }
  func.func @transform_3(%arg0: i32) -> (i32, i32) {
    %c0_i32 = arith.constant 0 : i32
    %c0_i32_0 = arith.constant 0 : i32
    return %arg0, %c0_i32 : i32, i32
  }
}

</mosaic_0001>

<bundles_post_ra>
// kernel: tpu_custom_call.1
= control target key start
LH: loop header
LB: loop body
LE: loop exit
PB: predicated region body
PF: predicated region fallthrough
CT: control target
= control target key end

     0   :  { %8 = vsyncpa [#allocation3], 0  ;;  %s256_s0 = inlined_call_operand.hbm [shape: bf16[8,32], index: 0, kind: input, shape index: {}]   ;;  %s257_s1 = inlined_call_operand.hbm [shape: bf16[32,128], index: 1, kind: input, shape index: {}]   ;;  %s258_s2 = inlined_call_operand.vmem [shape: f32[1,128], index: 2, kind: input, shape index: {}]   ;;  %s259_s3 = inlined_call_operand.hbm [shape: f32[8,128], index: 3, kind: output, shape index: {}]  }
   0x1   :  { %9 = vsyncpa [#allocation6], 0 }
   0x2   :  { %10 = vsyncpa [#allocation4], 0  ;;  %s217_s12 = smov [#allocation2]   ;;  %s218_s14 = smov [#allocation5]  }
   0x3   :  { %s17_s13 = sshll.u32 %s217_s12, 4  ;;  %s26_s15 = sshll.u32 %s218_s14, 4  ;;  %s18_s13 = int_to_ptr.vmem [resolvable:$true] %s17_s13  ;;  %s27_s15 = int_to_ptr.vmem [resolvable:$true] %s26_s15 }
   0x4   :  { %s159_s16 = scalar_lea.vmem %s18_s13, 64  ;;  %p164_p1 = scmp.lt.s32.totalorder %s18_s13, %s18_s13 }
   0x5   :  { %p160_p0 = scmp.ne.s32.totalorder %s18_s13, %s159_s16  ;;  %p165_p2 = scmp.lt.s32.totalorder %s159_s16, %s159_s16 }
   0x7   :  { %p166_p3 = por %p165_p2, %p164_p1 }
   0x9   :  { %p167_p4 = pnand %p166_p3, %p160_p0 }
   0xb   :  { %170 = shalt.err (!%p167_p4)
}
   0xc   :  { %20 = dma.hbm_to_vmem [thread:$0]  %s256_s0, 64, %s18_s13, [#allocation3]  }
   0xd   :  { %s179_s19 = scalar_lea.vmem %s27_s15, 256  ;;  %p184_p6 = scmp.lt.s32.totalorder %s27_s15, %s27_s15 }
   0xe   :  { %p180_p5 = scmp.ne.s32.totalorder %s27_s15, %s179_s19  ;;  %p185_p7 = scmp.lt.s32.totalorder %s179_s19, %s179_s19 }
  0x10   :  { %p186_p8 = por %p185_p7, %p184_p6 }
  0x12   :  { %p187_p9 = pnand %p186_p8, %p180_p5 }
  0x14   :  { %190 = shalt.err (!%p187_p9)
}
  0x15   :  { %s219_s20 = smov 64   ;;  %s220_s21 = smov 4  }
  0x16   :  { %32 = dma.hbm_to_vmem [thread:$0]  %s257_s1, 256, %s27_s15, [#allocation6], %s219_s20, %s219_s20, %s220_s21  }
  0x17   :  { %211 = dma.done.wait [#allocation3], 64  }
  0x18   :  { %212 = vsyncadd [#allocation3], 4294967232 }
  0x19   :  { %213 = dma.done.wait [#allocation6], 256  }
  0x1a   :  { %214 = vsyncadd [#allocation6], 4294967040  ;;  %v221_v0 = vmov 0.0   ;;  %vm222_vm0 = vmmov 0   ;;  %v149_v1 = vld [vmem:[#allocation5 + $0x8] sm:$0xff]   ;;  %v150_v2 = vld [vmem:[#allocation5] sm:$0xff]  }
  0x1b   :  { %134 = vmatprep.subr.bf16.mxu0 %v221_v0  ;;  %138 = vmatprep.mubr.msk.bf16.mxu0 %vm222_vm0, %v221_v0  ;;  %v42_v3 = vld [vmem:[#allocation2] sm:$0xf]  ;;  %vm66_vm1 = vcmask 261120   ;;  %s223_s1 = smov [#allocation7]  }
  0x1c   :  { %135 = vmatpush3.bf16.msra.mxu0 %v149_v1  ;;  %v127_v4 = vld [vmem:[%s258_s2] ss:$0 sm:$0xff]  ;;  %s117_s25 = sshll.u32 %s223_s1, 4  ;;  %s118_s25 = int_to_ptr.vmem [resolvable:$true] %s117_s25 }
  0x1d   :  { %136 = vmatprep.subr.bf16.mxu0 %v221_v0  ;;  %s191_s26 = scalar_lea.vmem %s118_s25, 128  ;;  %p196_p11 = scmp.lt.s32.totalorder %s118_s25, %s118_s25 }
  0x1e   :  { %p192_p10 = scmp.ne.s32.totalorder %s118_s25, %s191_s26  ;;  %p197_p12 = scmp.lt.s32.totalorder %s191_s26, %s191_s26 }
  0x20   :  { %137 = vmatpush3.bf16.msra.mxu0 %v150_v2  ;;  %p198_p13 = por %p197_p12, %p196_p11 }
  0x22   :  { %p199_p0 = pnand %p198_p13, %p192_p10 }
  0x23   :  { %139 = vmatmul.mubr.msk.bf16.vlgmr.msra.gmra.mxu0 %vm66_vm1, %v42_v3 }
  0xe3   :  { %v104_v5 = vpop.f32.mrf.mxu0 }
  0xe4   :  { %v105_v6 = vadd.f32 %v127_v4, %v104_v5 }
  0xe5   :  { %v140_v7 = vpop.f32.mrf.mxu0 }
  0xe6   :  { %110 = vst [vmem:[#allocation7] sm:$0xff] %v105_v6 }
  0xe7   :  { %v107_v8 = vpop.f32.mrf.mxu0 }
  0xe8   :  { %202 = shalt.err (!%p199_p0)
}
  0xe9   :  { %120 = dma.vmem_to_hbm [thread:$0]  %s118_s25, 128, %s259_s3, [#allocation4]   ;;  %v141_v9 = vpop.f32.mrf.mxu0 }
  0xea   :  { %215 = dma.done.wait [#allocation4], 128  }
  0xeb   :  { %216 = vsyncadd [#allocation4], 4294967168 }
  0xec   :  { %124 = vsyncpa [#allocation3], 1 }
  0xed   :  { %125 = vsyncpa [#allocation6], 1 }
  0xee   :  { %126 = vsyncpa [#allocation4], 1 }

// kernel: tpu_custom_call.1
= control target key start
LH: loop header
LB: loop body
LE: loop exit
PB: predicated region body
PF: predicated region fallthrough
CT: control target
= control target key end

     0   :  { %8 = vsyncpa [#allocation3], 0  ;;  %s256_s0 = inlined_call_operand.hbm [shape: bf16[8,32], index: 0, kind: input, shape index: {}]   ;;  %s257_s1 = inlined_call_operand.hbm [shape: bf16[32,128], index: 1, kind: input, shape index: {}]   ;;  %s258_s2 = inlined_call_operand.vmem [shape: f32[1,128], index: 2, kind: input, shape index: {}]   ;;  %s259_s3 = inlined_call_operand.hbm [shape: f32[8,128], index: 3, kind: output, shape index: {}]  }
   0x1   :  { %9 = vsyncpa [#allocation6], 0 }
   0x2   :  { %10 = vsyncpa [#allocation4], 0  ;;  %s217_s12 = smov [#allocation2]   ;;  %s218_s14 = smov [#allocation5]  }
   0x3   :  { %s17_s13 = sshll.u32 %s217_s12, 4  ;;  %s26_s15 = sshll.u32 %s218_s14, 4  ;;  %s18_s13 = int_to_ptr.vmem [resolvable:$true] %s17_s13  ;;  %s27_s15 = int_to_ptr.vmem [resolvable:$true] %s26_s15 }
   0x4   :  { %s159_s16 = scalar_lea.vmem %s18_s13, 64  ;;  %p164_p1 = scmp.lt.s32.totalorder %s18_s13, %s18_s13 }
   0x5   :  { %p160_p0 = scmp.ne.s32.totalorder %s18_s13, %s159_s16  ;;  %p165_p2 = scmp.lt.s32.totalorder %s159_s16, %s159_s16 }
   0x7   :  { %p166_p3 = por %p165_p2, %p164_p1 }
   0x9   :  { %p167_p4 = pnand %p166_p3, %p160_p0 }
   0xb   :  { %170 = shalt.err (!%p167_p4)
}
   0xc   :  { %20 = dma.hbm_to_vmem [thread:$0]  %s256_s0, 64, %s18_s13, [#allocation3]  }
   0xd   :  { %s179_s19 = scalar_lea.vmem %s27_s15, 256  ;;  %p184_p6 = scmp.lt.s32.totalorder %s27_s15, %s27_s15 }
   0xe   :  { %p180_p5 = scmp.ne.s32.totalorder %s27_s15, %s179_s19  ;;  %p185_p7 = scmp.lt.s32.totalorder %s179_s19, %s179_s19 }
  0x10   :  { %p186_p8 = por %p185_p7, %p184_p6 }
  0x12   :  { %p187_p9 = pnand %p186_p8, %p180_p5 }
  0x14   :  { %190 = shalt.err (!%p187_p9)
}
  0x15   :  { %s219_s20 = smov 64   ;;  %s220_s21 = smov 4  }
  0x16   :  { %32 = dma.hbm_to_vmem [thread:$0]  %s257_s1, 256, %s27_s15, [#allocation6], %s219_s20, %s219_s20, %s220_s21  }
  0x17   :  { %211 = dma.done.wait [#allocation3], 64  }
  0x18   :  { %212 = vsyncadd [#allocation3], 4294967232 }
  0x19   :  { %213 = dma.done.wait [#allocation6], 256  }
  0x1a   :  { %214 = vsyncadd [#allocation6], 4294967040  ;;  %v221_v0 = vmov 0.0   ;;  %vm222_vm0 = vmmov 0   ;;  %v149_v1 = vld [vmem:[#allocation5 + $0x8] sm:$0xff]   ;;  %v150_v2 = vld [vmem:[#allocation5] sm:$0xff]  }
  0x1b   :  { %134 = vmatprep.subr.bf16.mxu0 %v221_v0  ;;  %138 = vmatprep.mubr.msk.bf16.mxu0 %vm222_vm0, %v221_v0  ;;  %v42_v3 = vld [vmem:[#allocation2] sm:$0xf]  ;;  %vm66_vm1 = vcmask 261120   ;;  %s223_s1 = smov [#allocation7]  }
  0x1c   :  { %135 = vmatpush3.bf16.msra.mxu0 %v149_v1  ;;  %v127_v4 = vld [vmem:[%s258_s2] ss:$0 sm:$0xff]  ;;  %s117_s25 = sshll.u32 %s223_s1, 4  ;;  %s118_s25 = int_to_ptr.vmem [resolvable:$true] %s117_s25 }
  0x1d   :  { %136 = vmatprep.subr.bf16.mxu0 %v221_v0  ;;  %s191_s26 = scalar_lea.vmem %s118_s25, 128  ;;  %p196_p11 = scmp.lt.s32.totalorder %s118_s25, %s118_s25 }
  0x1e   :  { %p192_p10 = scmp.ne.s32.totalorder %s118_s25, %s191_s26  ;;  %p197_p12 = scmp.lt.s32.totalorder %s191_s26, %s191_s26 }
  0x20   :  { %137 = vmatpush3.bf16.msra.mxu0 %v150_v2  ;;  %p198_p13 = por %p197_p12, %p196_p11 }
  0x22   :  { %p199_p0 = pnand %p198_p13, %p192_p10 }
  0x23   :  { %139 = vmatmul.mubr.msk.bf16.vlgmr.msra.gmra.mxu0 %vm66_vm1, %v42_v3 }
  0xe3   :  { %v104_v5 = vpop.f32.mrf.mxu0 }
  0xe4   :  { %v105_v6 = vadd.f32 %v127_v4, %v104_v5 }
  0xe5   :  { %v140_v7 = vpop.f32.mrf.mxu0 }
  0xe6   :  { %110 = vst [vmem:[#allocation7] sm:$0xff] %v105_v6 }
  0xe7   :  { %v107_v8 = vpop.f32.mrf.mxu0 }
  0xe8   :  { %202 = shalt.err (!%p199_p0)
}
  0xe9   :  { %120 = dma.vmem_to_hbm [thread:$0]  %s118_s25, 128, %s259_s3, [#allocation4]   ;;  %v141_v9 = vpop.f32.mrf.mxu0 }
  0xea   :  { %215 = dma.done.wait [#allocation4], 128  }
  0xeb   :  { %216 = vsyncadd [#allocation4], 4294967168 }
  0xec   :  { %124 = vsyncpa [#allocation3], 1 }
  0xed   :  { %125 = vsyncpa [#allocation6], 1 }
  0xee   :  { %126 = vsyncpa [#allocation4], 1 }

</bundles_post_ra>
